<compile_context>
chip_gen: v6e
topology: v6e:2x2x1
jax: 0.10.0
libtpu: 0.0.40
codegen_flags: <defaults>
</compile_context>

<pallas_src>
import jax
import jax.numpy as jnp
from jax.experimental import pallas as pl
from jax.experimental.pallas import tpu as pltpu


def _round_up(x, m):
    return ((x + m - 1) // m) * m


def cross_encoder_kernel(triple_ref, time_ref, w1a_ref, w1b_ref, b1_ref,
                         w2_ref, b2_ref, o_ref):
    # triple_ref: [TB, E] f32      w1a_ref: [E, H] bf16
    # time_ref  : [TB, T] f32      w1b_ref: [T, H] bf16
    # b1_ref    : [1, H]  f32      w2_ref : [1, H] f32     b2_ref: [1, 1] f32
    # o_ref     : [8, TB // 8] f32 (lane-dense output layout)
    tb = triple_ref.shape[0]

    # In-kernel bf16 cast (VPU) so f32 inputs are read from HBM exactly once;
    # accumulation stays f32 via preferred_element_type.
    h = jnp.dot(triple_ref[...].astype(jnp.bfloat16), w1a_ref[...],
                preferred_element_type=jnp.float32)
    h += jnp.dot(time_ref[...].astype(jnp.bfloat16), w1b_ref[...],
                 preferred_element_type=jnp.float32)
    h += b1_ref[...]
    h = jnp.maximum(h, 0.0)                                # relu on the VPU

    # Linear(64 -> 1): VPU multiply + lane reduction (keeps the MXU on layer 1).
    out = jnp.sum(h * w2_ref[...], axis=-1, keepdims=True) + b2_ref[...]

    # Relayout [TB, 1] -> [8, TB//8]: full-width unmasked stores + small,
    # lane-dense out buffer (row-major order is preserved, so the wrapper's
    # flatten recovers batch order).
    o_ref[...] = out.reshape(8, tb // 8).astype(o_ref.dtype)


def cross_encoder_with_time(triple_encoding, time, params, *, tile_b=8192):
    """Fused forward. triple [B,E], time [B,T] -> out [B,1] (f32).

    tile_b: rows per grid step.  8192 fits comfortably on v5e/v6e/v7x with the
    explicit vmem limit below; v7x users may raise to 16K-32K (and should aim
    for an even number of tiles so both TensorCores get work)."""
    w1a, w1b, b1, w2, b2 = params
    B, E = triple_encoding.shape
    Bt, T = time.shape
    assert Bt == B
    H = w1a.shape[1]

    # Activations stay f32 (cast to bf16 happens inside the kernel).
    triple = triple_encoding.astype(jnp.float32)
    tme = time.astype(jnp.float32)
    # Weight/bias casts are a few KiB -> done once in the wrapper.
    w1a_c = w1a.astype(jnp.bfloat16)
    w1b_c = w1b.astype(jnp.bfloat16)
    b1_c = b1.reshape(1, H).astype(jnp.float32)
    w2_c = w2.reshape(1, H).astype(jnp.float32)
    b2_c = b2.reshape(1, 1).astype(jnp.float32)

    # Pad only to a sublane multiple of 8 (at most 7 fake rows); no pad to a
    # multiple of tile_b -- the last grid block may be partial.
    bp = _round_up(B, 8)
    if bp != B:
        pad = bp - B
        triple = jnp.pad(triple, ((0, pad), (0, 0)))
        tme = jnp.pad(tme, ((0, pad), (0, 0)))

    tb = min(tile_b, bp)
    tb = max(8, (tb // 8) * 8)           # multiple of 8 sublanes
    num_tiles = pl.cdiv(bp, tb)

    # VMEM budget from the actual lane-padded, double-buffered blocks: each
    # f32 input block pads its 32/64-lane minor dim to 128 lanes in VMEM.
    inp_buf = tb * 128 * 4
    out_buf = 8 * max(tb // 8, 128) * 4
    vmem_limit = int(4 * inp_buf          # 2 inputs x 2 buffers
                     + 4 * inp_buf        # bf16 copies + h + elementwise temps
                     + 2 * out_buf        # out x 2 buffers (lane-dense)
                     + (4 << 20))         # weights + compiler slack

    cost = pl.CostEstimate(
        flops=2 * bp * H * (E + T + 1),
        transcendentals=0,
        bytes_accessed=(bp * (E + T) * 4            # f32 activations, read once
                        + (E + T) * H * 2           # bf16 fusing weight
                        + (2 * H + 1) * 4           # b1, w2, b2
                        + bp * 4),                  # output
    )

    out2d = pl.pallas_call(
        cross_encoder_kernel,
        out_shape=jax.ShapeDtypeStruct((num_tiles * 8, tb // 8), jnp.float32),
        grid=(num_tiles,),
        in_specs=[
            pl.BlockSpec((tb, E), lambda i: (i, 0)),     # triple tile (f32)
            pl.BlockSpec((tb, T), lambda i: (i, 0)),     # time tile (f32)
            pl.BlockSpec((E, H), lambda i: (0, 0)),      # w1a (resident)
            pl.BlockSpec((T, H), lambda i: (0, 0)),      # w1b (resident)
            pl.BlockSpec((1, H), lambda i: (0, 0)),      # b1
            pl.BlockSpec((1, H), lambda i: (0, 0)),      # w2 row
            pl.BlockSpec((1, 1), lambda i: (0, 0)),      # b2
        ],
        out_specs=pl.BlockSpec((8, tb // 8), lambda i: (i, 0)),
        compiler_params=pltpu.CompilerParams(
            dimension_semantics=("parallel",),
            vmem_limit_bytes=vmem_limit),
        cost_estimate=cost,
    )(triple, tme, w1a_c, w1b_c, b1_c, w2_c, b2_c)

    # Row-major flatten restores batch order; drop pad / partial-block rows.
    return out2d.reshape(-1)[:B].reshape(B, 1)


def init_params(key, triple_embedding_size, time_dimension=64, hidden=64):
    """nn.Linear-style init. The fusing weight is stored transposed ([in,out])
    and pre-split into triple/time row blocks so the kernel never needs the
    concatenated input."""
    E, T, H = triple_embedding_size, time_dimension, hidden
    d_in = E + T
    k1, k2, k3, k4 = jax.random.split(key, 4)
    lim1 = 1.0 / jnp.sqrt(d_in)
    lim2 = 1.0 / jnp.sqrt(H)
    w1 = jax.random.uniform(k1, (d_in, H), jnp.float32, -lim1, lim1)
    b1 = jax.random.uniform(k2, (H,), jnp.float32, -lim1, lim1)
    w2 = jax.random.uniform(k3, (H,), jnp.float32, -lim2, lim2)
    b2 = jax.random.uniform(k4, (1,), jnp.float32, -lim2, lim2)
    w1a, w1b = w1[:E], w1[E:]          # split once; no runtime concat
    return (w1a, w1b, b1, w2, b2)


if __name__ == "__main__":
    B = 8                       # tiny demo batch; production sizing assumes B in the thousands
    E = 32                      # triple_embedding_size
    T = 64                      # time_dimension
    H = 64

    key = jax.random.PRNGKey(0)
    kp, kx, kt = jax.random.split(key, 3)
    params = init_params(kp, E, T, H)

    triple_encoding = jax.random.normal(kx, (B, E), jnp.float32)
    time = jax.random.normal(kt, (B, T), jnp.float32)

    out = cross_encoder_with_time(triple_encoding, time, params)
    out = jax.block_until_ready(out)
    assert out.shape == (B, 1)

    w1a, w1b, b1, w2, b2 = params

    # Reference mirroring the kernel numerics (bf16 matmul operands, f32 acc).
    bf = jnp.bfloat16
    h_ref = (jnp.dot(triple_encoding.astype(bf), w1a.astype(bf),
                     preferred_element_type=jnp.float32)
             + jnp.dot(time.astype(bf), w1b.astype(bf),
                       preferred_element_type=jnp.float32)
             + b1)
    h_ref = jnp.maximum(h_ref, 0.0)
    ref_bf16 = jnp.sum(h_ref * w2[None, :], axis=-1, keepdims=True) + b2
    assert jnp.allclose(out, ref_bf16, atol=2e-3, rtol=2e-3)

    # Full-precision PyTorch-equivalent reference (loose tolerance because the
    # kernel feeds the MXU in bf16).
    quad = jnp.concatenate([triple_encoding, time], axis=1)
    w1 = jnp.concatenate([w1a, w1b], axis=0)
    ref_f32 = jnp.maximum(quad @ w1 + b1, 0.0) @ w2[:, None] + b2
    assert jnp.allclose(out, ref_f32, atol=1e-1, rtol=1e-1)

    print("KERNEL_OK")
</pallas_src>

<mosaic_0001>
module attributes {stable_mosaic.version = 11 : i64} {
  func.func @cross_encoder_kernel(%arg0: i32, %arg1: memref<8x32xf32, #tpu.memory_space<vmem>>, %arg2: memref<8x64xf32, #tpu.memory_space<vmem>>, %arg3: memref<32x64xbf16, #tpu.memory_space<vmem>>, %arg4: memref<64x64xbf16, #tpu.memory_space<vmem>>, %arg5: memref<1x64xf32, #tpu.memory_space<vmem>>, %arg6: memref<1x64xf32, #tpu.memory_space<vmem>>, %arg7: memref<1x1xf32, #tpu.memory_space<vmem>>, %arg8: memref<8x1xf32, #tpu.memory_space<vmem>>) attributes {dimension_semantics = [#tpu.dimension_semantics<parallel>], iteration_bounds = array<i64: 1>, scalar_prefetch = 0 : i64, scratch_operands = 0 : i64, tpu.core_type = #tpu.core_type<tc>, window_params = [{transform_indices = @transform_0, window_bounds = array<i64: 8, 32>}, {transform_indices = @transform_1, window_bounds = array<i64: 8, 64>}, {pipeline_mode = #tpu.pipeline_mode<synchronous>, transform_indices = @transform_2, window_bounds = array<i64: 32, 64>}, {pipeline_mode = #tpu.pipeline_mode<synchronous>, transform_indices = @transform_3, window_bounds = array<i64: 64, 64>}, {pipeline_mode = #tpu.pipeline_mode<synchronous>, transform_indices = @transform_4, window_bounds = array<i64: 1, 64>}, {pipeline_mode = #tpu.pipeline_mode<synchronous>, transform_indices = @transform_5, window_bounds = array<i64: 1, 64>}, {pipeline_mode = #tpu.pipeline_mode<synchronous>, transform_indices = @transform_6, window_bounds = array<i64: 1, 1>}, {transform_indices = @transform_7, window_bounds = array<i64: 8, 1>}]} {
    %c0 = arith.constant 0 : index
    %c0_0 = arith.constant 0 : index
    %0 = vector.load %arg1[%c0, %c0_0] : memref<8x32xf32, #tpu.memory_space<vmem>>, vector<8x32xf32>
    %1 = arith.truncf %0 : vector<8x32xf32> to vector<8x32xbf16>
    %c0_1 = arith.constant 0 : index
    %c0_2 = arith.constant 0 : index
    %2 = vector.load %arg3[%c0_1, %c0_2] : memref<32x64xbf16, #tpu.memory_space<vmem>>, vector<32x64xbf16>
    %cst = arith.constant dense<0.000000e+00> : vector<8x64xf32>
    %3 = tpu.matmul %1, %2, %cst {dimension_numbers = #tpu.dot_dimension_numbers<[1], [0], [0], [1], [0, 0, 1, 1], [], []>} : vector<8x32xbf16>, vector<32x64xbf16>, vector<8x64xf32> -> vector<8x64xf32>
    %c0_3 = arith.constant 0 : index
    %c0_4 = arith.constant 0 : index
    %4 = vector.load %arg2[%c0_3, %c0_4] : memref<8x64xf32, #tpu.memory_space<vmem>>, vector<8x64xf32>
    %5 = arith.truncf %4 : vector<8x64xf32> to vector<8x64xbf16>
    %c0_5 = arith.constant 0 : index
    %c0_6 = arith.constant 0 : index
    %6 = vector.load %arg4[%c0_5, %c0_6] : memref<64x64xbf16, #tpu.memory_space<vmem>>, vector<64x64xbf16>
    %cst_7 = arith.constant dense<0.000000e+00> : vector<8x64xf32>
    %7 = tpu.matmul %5, %6, %cst_7 {dimension_numbers = #tpu.dot_dimension_numbers<[1], [0], [0], [1], [0, 0, 1, 1], [], []>} : vector<8x64xbf16>, vector<64x64xbf16>, vector<8x64xf32> -> vector<8x64xf32>
    %8 = arith.addf %3, %7 : vector<8x64xf32>
    %c0_8 = arith.constant 0 : index
    %c0_9 = arith.constant 0 : index
    %9 = vector.load %arg5[%c0_8, %c0_9] : memref<1x64xf32, #tpu.memory_space<vmem>>, vector<1x64xf32>
    %10 = vector.broadcast %9 : vector<1x64xf32> to vector<8x64xf32>
    %11 = arith.addf %8, %10 : vector<8x64xf32>
    %cst_10 = arith.constant 0.000000e+00 : f32
    %12 = vector.broadcast %cst_10 : f32 to vector<8x64xf32>
    %13 = arith.maximumf %11, %12 : vector<8x64xf32>
    %c0_11 = arith.constant 0 : index
    %c0_12 = arith.constant 0 : index
    %14 = vector.load %arg6[%c0_11, %c0_12] : memref<1x64xf32, #tpu.memory_space<vmem>>, vector<1x64xf32>
    %15 = vector.broadcast %14 : vector<1x64xf32> to vector<8x64xf32>
    %16 = arith.mulf %13, %15 : vector<8x64xf32>
    %cst_13 = arith.constant dense<0.000000e+00> : vector<8xf32>
    %17 = vector.multi_reduction <add>, %16, %cst_13 [1] : vector<8x64xf32> to vector<8xf32>
    %18 = vector.shape_cast %17 : vector<8xf32> to vector<8x1xf32>
    %c0_14 = arith.constant 0 : index
    %c0_15 = arith.constant 0 : index
    %19 = vector.load %arg7[%c0_14, %c0_15] : memref<1x1xf32, #tpu.memory_space<vmem>>, vector<1x1xf32>
    %20 = vector.broadcast %19 : vector<1x1xf32> to vector<8x1xf32>
    %21 = arith.addf %18, %20 : vector<8x1xf32>
    %c0_16 = arith.constant 0 : index
    %c0_17 = arith.constant 0 : index
    %22 = vector.load %arg8[%c0_16, %c0_17] : memref<8x1xf32, #tpu.memory_space<vmem>>, vector<8x1xf32>
    tpu.vector_store %arg8[%c0_16, %c0_17], %21 {strides = array<i32>} : memref<8x1xf32, #tpu.memory_space<vmem>>, vector<8x1xf32>,
    return
  }
  func.func @transform_0(%arg0: i32) -> (i32, i32) {
    %c0_i32 = arith.constant 0 : i32
    %c0_i32_0 = arith.constant 0 : i32
    return %arg0, %c0_i32 : i32, i32
  }
  func.func @transform_1(%arg0: i32) -> (i32, i32) {
    %c0_i32 = arith.constant 0 : i32
    %c0_i32_0 = arith.constant 0 : i32
    return %arg0, %c0_i32 : i32, i32
  }
  func.func @transform_2(%arg0: i32) -> (i32, i32) {
    %c0_i32 = arith.constant 0 : i32
    %c0_i32_0 = arith.constant 0 : i32
    %c0_i32_1 = arith.constant 0 : i32
    return %c0_i32, %c0_i32_0 : i32, i32
  }
  func.func @transform_3(%arg0: i32) -> (i32, i32) {
    %c0_i32 = arith.constant 0 : i32
    %c0_i32_0 = arith.constant 0 : i32
    %c0_i32_1 = arith.constant 0 : i32
    return %c0_i32, %c0_i32_0 : i32, i32
  }
  func.func @transform_4(%arg0: i32) -> (i32, i32) {
    %c0_i32 = arith.constant 0 : i32
    %c0_i32_0 = arith.constant 0 : i32
    %c0_i32_1 = arith.constant 0 : i32
    return %c0_i32, %c0_i32_0 : i32, i32
  }
  func.func @transform_5(%arg0: i32) -> (i32, i32) {
    %c0_i32 = arith.constant 0 : i32
    %c0_i32_0 = arith.constant 0 : i32
    %c0_i32_1 = arith.constant 0 : i32
    return %c0_i32, %c0_i32_0 : i32, i32
  }
  func.func @transform_6(%arg0: i32) -> (i32, i32) {
    %c0_i32 = arith.constant 0 : i32
    %c0_i32_0 = arith.constant 0 : i32
    %c0_i32_1 = arith.constant 0 : i32
    return %c0_i32, %c0_i32_0 : i32, i32
  }
  func.func @transform_7(%arg0: i32) -> (i32, i32) {
    %c0_i32 = arith.constant 0 : i32
    %c0_i32_0 = arith.constant 0 : i32
    return %arg0, %c0_i32 : i32, i32
  }
}

</mosaic_0001>

<bundles_post_ra>
// kernel: tpu_custom_call.1
= control target key start
LH: loop header
LB: loop body
LE: loop exit
PB: predicated region body
PF: predicated region fallthrough
CT: control target
= control target key end

     0   :  { %s470_s0 = inlined_call_operand.hbm [shape: f32[8,32], index: 0, kind: input, shape index: {}]   ;;  %s471_s1 = inlined_call_operand.hbm [shape: f32[8,64], index: 1, kind: input, shape index: {}]   ;;  %s472_s2 = inlined_call_operand.hbm [shape: bf16[32,64], index: 2, kind: input, shape index: {}]   ;;  %s473_s3 = inlined_call_operand.hbm [shape: bf16[64,64], index: 3, kind: input, shape index: {}]   ;;  %s474_s4 = inlined_call_operand.vmem [shape: f32[1,64], index: 4, kind: input, shape index: {}]   ;;  %s475_s5 = inlined_call_operand.vmem [shape: f32[1,64], index: 5, kind: input, shape index: {}]   ;;  %s476_s6 = inlined_call_operand.<no memory space> [shape: f32[1,1], index: 6, kind: input, shape index: {}]   ;;  %s477_s7 = inlined_call_operand.vmem [shape: f32[8,1], index: 7, kind: output, shape index: {}]  }
   0x1   :  { %v12_v0 = vstv %s476_s6 }
   0x2   :  { %13 = vst [vmem:[#allocation2] sm:$0x1] %v12_v0 }
   0x3   :  { %14 = vsyncpa [#allocation4], 0 }
   0x4   :  { %15 = vsyncpa [#allocation6], 0 }
   0x5   :  { %16 = vsyncpa [#allocation9], 0  ;;  %s396_s26 = smov [#allocation5]   ;;  %s397_s28 = smov [#allocation3]  }
   0x6   :  { %s33_s27 = sshll.u32 %s396_s26, 4  ;;  %s23_s29 = sshll.u32 %s397_s28, 4  ;;  %s34_s27 = int_to_ptr.vmem [resolvable:$true] %s33_s27  ;;  %s24_s29 = int_to_ptr.vmem [resolvable:$true] %s23_s29 }
   0x7   :  { %s318_s30 = scalar_lea.vmem %s34_s27, 128  ;;  %p323_p1 = scmp.lt.s32.totalorder %s34_s27, %s34_s27 }
   0x8   :  { %p319_p0 = scmp.ne.s32.totalorder %s34_s27, %s318_s30  ;;  %p324_p2 = scmp.lt.s32.totalorder %s318_s30, %s318_s30 }
   0xa   :  { %p325_p3 = por %p324_p2, %p323_p1 }
   0xc   :  { %p326_p4 = pnand %p325_p3, %p319_p0 }
   0xe   :  { %329 = shalt.err (!%p326_p4)
}
   0xf   :  { %36 = dma.hbm_to_vmem [thread:$0]  %s471_s1, 128, %s34_s27, [#allocation6]  }
  0x10   :  { %s338_s6 = scalar_lea.vmem %s24_s29, 128  ;;  %p343_p6 = scmp.lt.s32.totalorder %s24_s29, %s24_s29 }
  0x11   :  { %p339_p5 = scmp.ne.s32.totalorder %s24_s29, %s338_s6  ;;  %p344_p7 = scmp.lt.s32.totalorder %s338_s6, %s338_s6 }
  0x13   :  { %p345_p8 = por %p344_p7, %p343_p6 }
  0x15   :  { %p346_p9 = pnand %p345_p8, %p339_p5 }
  0x17   :  { %349 = shalt.err (!%p346_p9)
}
  0x18   :  { %26 = dma.hbm_to_vmem [thread:$0]  %s470_s0, 128, %s24_s29, [#allocation4]  }
  0x19   :  { %s398_s12 = smov [#allocation7]  }
  0x1a   :  { %s42_s13 = sshll.u32 %s398_s12, 4  ;;  %s43_s13 = int_to_ptr.vmem [resolvable:$true] %s42_s13 }
  0x1b   :  { %s358_s14 = scalar_lea.vmem %s43_s13, 256  ;;  %p363_p11 = scmp.lt.s32.totalorder %s43_s13, %s43_s13 }
  0x1c   :  { %p359_p10 = scmp.ne.s32.totalorder %s43_s13, %s358_s14  ;;  %p364_p12 = scmp.lt.s32.totalorder %s358_s14, %s358_s14 }
  0x1e   :  { %p365_p13 = por %p364_p12, %p363_p11 }
  0x20   :  { %p366_p0 = pnand %p365_p13, %p359_p10 }
  0x22   :  { %369 = shalt.err (!%p366_p0)
}
  0x23   :  { %s399_s1 = smov 64   ;;  %s400_s15 = smov 4  }
  0x24   :  { %48 = dma.hbm_to_vmem [thread:$0]  %s472_s2, 256, %s43_s13, [#allocation6], %s399_s1, %s399_s1, %s400_s15  }
  0x25   :  { %s401_s18 = smov [#allocation8]  }
  0x26   :  { %s54_s19 = sshll.u32 %s401_s18, 4  ;;  %s55_s19 = int_to_ptr.vmem [resolvable:$true] %s54_s19 }
  0x27   :  { %s378_s0 = scalar_lea.vmem %s55_s19, 512  ;;  %p383_p2 = scmp.lt.s32.totalorder %s55_s19, %s55_s19 }
  0x28   :  { %p379_p1 = scmp.ne.s32.totalorder %s55_s19, %s378_s0  ;;  %p384_p3 = scmp.lt.s32.totalorder %s378_s0, %s378_s0 }
  0x2a   :  { %p385_p4 = por %p384_p3, %p383_p2 }
  0x2c   :  { %p386_p5 = pnand %p385_p4, %p379_p1 }
  0x2e   :  { %389 = shalt.err (!%p386_p5)
}
  0x2f   :  { %60 = dma.hbm_to_vmem [thread:$0]  %s473_s3, 512, %s55_s19, [#allocation9], %s399_s1, %s399_s1, %s400_s15  }
  0x30   :  { %390 = dma.done.wait [#allocation4], 128  }
  0x31   :  { %391 = vsyncadd [#allocation4], 4294967168 }
  0x32   :  { %392 = dma.done.wait [#allocation6], 384  }
  0x33   :  { %393 = vsyncadd [#allocation6], 4294966912 }
  0x34   :  { %394 = dma.done.wait [#allocation9], 512  }
  0x35   :  { %395 = vsyncadd [#allocation9], 4294966784  ;;  %v402_v1 = vmov 0.0   ;;  %vm403_vm0 = vmmov 0   ;;  %v304_v2 = vld [vmem:[#allocation8 + $0x18] sm:$0xff]   ;;  %v306_v4 = vld [vmem:[#allocation8 + $0x10] sm:$0xff]  }
  0x36   :  { %276 = vmatprep.subr.bf16.mxu0 %v402_v1  ;;  %288 = vmatprep.subr.bf16.mxu1 %v402_v1  ;;  %v305_v3 = vld [vmem:[#allocation7 + $0x8] sm:$0xff]   ;;  %v307_v5 = vld [vmem:[#allocation7] sm:$0xff]   ;;  %v80_v6 = vld [vmem:[#allocation3] sm:$0xff]  ;;  %vm176_vm1 = vcmask 261120   ;;  %vm120_vm2 = vcmask 523264   ;;  %vm248_vm3 = vcmask 7168  }
  0x37   :  { %292 = vmatprep.mubr.msk.bf16.mxu1 %vm403_vm0, %v402_v1  ;;  %284 = vmatprep.mubr.msk.bf16.mxu0 %vm403_vm0, %v402_v1  ;;  %v308_v7 = vld [vmem:[#allocation8 + $0x8] sm:$0xff]   ;;  %v81_v8 = vpack.c.bf16 %v80_v6, %v80_v6  ;;  %v309_v9 = vld [vmem:[#allocation8] sm:$0xff]   ;;  %v265_v17 = vld [vmem:[%s474_s4] ss:$0 sm:$0xff] }
  0x38   :  { %277 = vmatpush3.bf16.msra.mxu0 %v304_v2  ;;  %289 = vmatpush3.bf16.msra.mxu1 %v305_v3  ;;  %v86_v10 = vld [vmem:[#allocation5] sm:$0xff]  ;;  %v266_v22 = vld [vmem:[%s475_s5] ss:$0 sm:$0xff] }
  0x39   :  { %278 = vmatprep.subr.bf16.mxu0 %v402_v1  ;;  %290 = vmatprep.subr.bf16.mxu1 %v402_v1  ;;  %v87_v11 = vpack.c.bf16 %v86_v10, %v86_v10  ;;  %v267_v27 = vld [vmem:[#allocation2] ss:$0 sm:$0xff] }
  0x3c   :  { %279 = vmatpush3.bf16.msra.mxu0 %v306_v4  ;;  %291 = vmatpush3.bf16.msra.mxu1 %v307_v5 }
  0x3d   :  { %280 = vmatprep.subr.bf16.mxu0 %v402_v1 }
  0x3f   :  { %293 = vmatmul.mubr.msk.bf16.vlgmr.msra.gmra.mxu1 %vm176_vm1, %v81_v8 }
  0x40   :  { %281 = vmatpush3.bf16.msra.mxu0 %v308_v7 }
  0x41   :  { %282 = vmatprep.subr.bf16.mxu0 %v402_v1 }
  0x44   :  { %283 = vmatpush3.bf16.msra.mxu0 %v309_v9 }
  0x47   :  { %285 = vmatmul.mubr.msk.bf16.vlgmr.msra.gmra.mxu0 %vm120_vm2, %v87_v11 }
  0xff   :  { %v214_v12 = vpop.f32.mrf.mxu1 }
 0x101   :  { %v294_v13 = vpop.f32.mrf.mxu1 }
 0x103   :  { %v217_v14 = vpop.f32.mrf.mxu1 }
 0x105   :  { %v295_v15 = vpop.f32.mrf.mxu1 }
 0x107   :  { %v158_v16 = vpop.f32.mrf.mxu0 }
 0x108   :  { %v215_v18 = vadd.f32 %v214_v12, %v158_v16 }
 0x109   :  { %v286_v19 = vpop.f32.mrf.mxu0 }
 0x10a   :  { %v227_v20 = vadd.f32 %v265_v17, %v215_v18 }
 0x10b   :  { %v161_v21 = vpop.f32.mrf.mxu0 }
 0x10c   :  { %v228_v23 = vmax.f32 %v227_v20, 0.0 }
 0x10d   :  { %v287_v24 = vpop.f32.mrf.mxu0 }
 0x10e   :  { %v236_v25 = vmul.f32 %v266_v22, %v228_v23 }
 0x110   :  { %v237_v26 = vsel %vm120_vm2, %v236_v25, 0.0 }
 0x111   :  { %238 = vadd.xlane.f32.xlu0 %v237_v26 }
 0x19a   :  { %v239_v28 = vpop.xlane.xlu0 %238 }
 0x19b   :  { %v247_v29 = vadd.f32 %v267_v27, %v239_v28 }
 0x19d   :  { %249 = vst.msk [vmem:[%s477_s7] sm:$0xff] %vm248_vm3, %v247_v29 }
 0x19e   :  { %254 = vsyncpa [#allocation4], 1 }
 0x19f   :  { %255 = vsyncpa [#allocation6], 1 }
 0x1a0   :  { %256 = vsyncpa [#allocation9], 1 }

</bundles_post_ra>
